<compile_context>
chip_gen: v6e
topology: v6e:2x2x1
jax: 0.10.0
libtpu: 0.0.40
codegen_flags: <defaults>
</compile_context>

<pallas_src>
import functools

import jax
import jax.numpy as jnp
from jax.experimental import pallas as pl
from jax.experimental.pallas import tpu as pltpu


def _round_up(x, m):
    return (x + m - 1) // m * m


def _choose_tile_n(n, c, itemsize, target_block_bytes=4 * 1024 * 1024,
                   max_rows=2048):
    """Pick a batch-tile height: large enough to amortize grid-step overhead,
    aligned to the sublane packing of the input dtype, capped for VMEM."""
    row_align = 8 * max(1, 4 // int(itemsize))   # 8 rows (f32) / 16 rows (bf16)
    rows = target_block_bytes // max(1, c * int(itemsize))
    rows = max(row_align, (rows // row_align) * row_align)
    rows = min(rows, max_rows)
    rows = min(rows, _round_up(n, row_align))
    return int(rows)


def _label_smoothing_kernel(pred_ref, tgt_ref, out_ref, *,
                            smoothing, confidence, num_classes, batch, tile_n):
    i = pl.program_id(0)

    x = pred_ref[...].astype(jnp.float32)                       # (TN, C)

    # Stable log-softmax pieces (logp itself is never materialized).
    m = jnp.max(x, axis=-1, keepdims=True)                      # (TN, 1)
    shifted = x - m                                             # (TN, C)
    lse = jnp.log(jnp.sum(jnp.exp(shifted), axis=-1, keepdims=True))  # (TN, 1)

    tgt = tgt_ref[...]                                          # (TN, 1) int32
    cls_ids = jax.lax.broadcasted_iota(jnp.int32, shifted.shape, 1)
    onehot = cls_ids == tgt                                     # (TN, C)

    shifted_tgt = jnp.sum(jnp.where(onehot, shifted, 0.0),
                          axis=-1, keepdims=True)               # (TN, 1)
    sum_shifted = jnp.sum(shifted, axis=-1, keepdims=True)      # (TN, 1)

    eps = smoothing / max(num_classes - 1, 1)
    # sum_c(-true_dist * logp)
    #   = -eps*(sum_shifted - C*lse) - (confidence-eps)*(shifted_tgt - lse)
    #   = -eps*sum_shifted - (confidence-eps)*shifted_tgt + lse
    # because eps*C + confidence - eps == 1 (true_dist sums to 1).
    row_loss = (-eps) * sum_shifted - (confidence - eps) * shifted_tgt + lse

    # Mask batch-padding rows of the last (partial) tile.
    row_ids = i * tile_n + jax.lax.broadcasted_iota(jnp.int32, (tile_n, 1), 0)
    row_loss = jnp.where(row_ids < batch, row_loss, 0.0)

    # Per-tile partial sum; independent across grid steps -> "parallel" axis.
    out_ref[...] = jnp.sum(row_loss).reshape(1, 1, 1)


def label_smoothing_loss(pred, target, *, classes, smoothing=0.0,
                         tile_n=None, target_block_bytes=4 * 1024 * 1024):
    """pred: (N, C) float32/bfloat16; target: (N,) int. Returns scalar f32."""
    N, C = pred.shape
    assert C == classes, (C, classes)
    confidence = 1.0 - smoothing

    if tile_n is None:
        tile_n = _choose_tile_n(N, C, jnp.dtype(pred.dtype).itemsize,
                                target_block_bytes)
    n_pad = _round_up(N, tile_n)
    num_tiles = n_pad // tile_n

    if n_pad != N:
        pred = jnp.pad(pred, ((0, n_pad - N), (0, 0)))
        target = jnp.pad(target, (0, n_pad - N))
    target2d = target.astype(jnp.int32).reshape(n_pad, 1)

    kernel = functools.partial(
        _label_smoothing_kernel,
        smoothing=float(smoothing),
        confidence=float(confidence),
        num_classes=int(classes),
        batch=int(N),
        tile_n=int(tile_n),
    )

    partials = pl.pallas_call(
        kernel,
        out_shape=jax.ShapeDtypeStruct((num_tiles, 1, 1), jnp.float32),
        grid_spec=pltpu.PrefetchScalarGridSpec(
            num_scalar_prefetch=0,
            grid=(num_tiles,),
            in_specs=[
                pl.BlockSpec((tile_n, C), lambda i: (i, 0)),
                pl.BlockSpec((tile_n, 1), lambda i: (i, 0)),
            ],
            out_specs=pl.BlockSpec((1, 1, 1), lambda i: (i, 0, 0)),
        ),
        compiler_params=pltpu.CompilerParams(
            # Independent per-tile partials -> parallel grid axis so v7x
            # megacore can split the batch across its 2 TensorCores.
            dimension_semantics=("parallel",),
            vmem_limit_bytes=48 * 1024 * 1024,
        ),
    )(pred, target2d)

    # Final reduction + mean in the wrapper (cheap: num_tiles scalars).
    return jnp.sum(partials) / jnp.float32(N)


def _reference(pred, target, *, classes, smoothing):
    logp = jax.nn.log_softmax(pred.astype(jnp.float32), axis=-1)
    eps = smoothing / (classes - 1)
    true_dist = jnp.full_like(logp, eps)
    true_dist = true_dist.at[jnp.arange(pred.shape[0]), target].set(1.0 - smoothing)
    return jnp.mean(jnp.sum(-true_dist * logp, axis=-1))


if __name__ == "__main__":
    key = jax.random.PRNGKey(0)
    k1, k2, k3, k4 = jax.random.split(key, 4)

    # Small demo shapes consistent with the module: pred (N, C), target (N,).
    N, C = 16, 128
    smoothing = 0.1
    pred = jax.random.normal(k1, (N, C), dtype=jnp.float32)
    target = jax.random.randint(k2, (N,), 0, C, dtype=jnp.int32)

    loss = label_smoothing_loss(pred, target, classes=C, smoothing=smoothing)
    loss = jax.block_until_ready(loss)
    ref = _reference(pred, target, classes=C, smoothing=smoothing)
    assert jnp.allclose(loss, ref, atol=1e-5, rtol=1e-5), (loss, ref)

    # Multi-tile grid + ragged batch (padding rows masked in-kernel).
    N2, C2 = 50, 128
    pred2 = jax.random.normal(k3, (N2, C2), dtype=jnp.float32)
    target2 = jax.random.randint(k4, (N2,), 0, C2, dtype=jnp.int32)
    loss2 = label_smoothing_loss(pred2, target2, classes=C2, smoothing=0.2,
                                 tile_n=16)
    loss2 = jax.block_until_ready(loss2)
    ref2 = _reference(pred2, target2, classes=C2, smoothing=0.2)
    assert jnp.allclose(loss2, ref2, atol=1e-5, rtol=1e-5), (loss2, ref2)

    # bf16 logits path (upcast to f32 inside the kernel).
    pred_bf16 = pred.astype(jnp.bfloat16)
    loss3 = label_smoothing_loss(pred_bf16, target, classes=C,
                                 smoothing=smoothing)
    loss3 = jax.block_until_ready(loss3)
    ref3 = _reference(pred_bf16.astype(jnp.float32), target, classes=C,
                      smoothing=smoothing)
    assert jnp.allclose(loss3, ref3, atol=1e-4, rtol=1e-4), (loss3, ref3)

    print("KERNEL_OK")
</pallas_src>

<mosaic_0001>
module attributes {stable_mosaic.version = 11 : i64} {
  func.func @_label_smoothing_kernel(%arg0: i32, %arg1: memref<16x128xf32, #tpu.memory_space<vmem>>, %arg2: memref<16x1xi32, #tpu.memory_space<vmem>>, %arg3: memref<1x1x1xf32, #tpu.memory_space<vmem>>) attributes {dimension_semantics = [#tpu.dimension_semantics<parallel>], iteration_bounds = array<i64: 1>, scalar_prefetch = 0 : i64, scratch_operands = 0 : i64, tpu.core_type = #tpu.core_type<tc>, window_params = [{transform_indices = @transform_0, window_bounds = array<i64: 16, 128>}, {transform_indices = @transform_1, window_bounds = array<i64: 16, 1>}, {transform_indices = @transform_2, window_bounds = array<i64: 1, 1, 1>}]} {
    %c0 = arith.constant 0 : index
    %c0_0 = arith.constant 0 : index
    %0 = vector.load %arg1[%c0, %c0_0] : memref<16x128xf32, #tpu.memory_space<vmem>>, vector<16x128xf32>
    %cst = arith.constant dense<0xFF800000> : vector<16xf32>
    %1 = vector.multi_reduction <maximumf>, %0, %cst [1] : vector<16x128xf32> to vector<16xf32>
    %2 = vector.shape_cast %1 : vector<16xf32> to vector<16x1xf32>
    %3 = vector.broadcast %2 : vector<16x1xf32> to vector<16x128xf32>
    %4 = arith.subf %0, %3 : vector<16x128xf32>
    %5 = math.exp %4 : vector<16x128xf32>
    %cst_1 = arith.constant dense<0.000000e+00> : vector<16xf32>
    %6 = vector.multi_reduction <add>, %5, %cst_1 [1] : vector<16x128xf32> to vector<16xf32>
    %7 = vector.shape_cast %6 : vector<16xf32> to vector<16x1xf32>
    %8 = math.log %7 : vector<16x1xf32>
    %c0_2 = arith.constant 0 : index
    %c0_3 = arith.constant 0 : index
    %9 = vector.load %arg2[%c0_2, %c0_3] : memref<16x1xi32, #tpu.memory_space<vmem>>, vector<16x1xi32>
    %10 = tpu.iota {dimensions = array<i32: 1>} : vector<16x128xi32>
    %11 = vector.broadcast %9 : vector<16x1xi32> to vector<16x128xi32>
    %12 = arith.cmpi eq, %10, %11 : vector<16x128xi32>
    %cst_4 = arith.constant 0.000000e+00 : f32
    %13 = vector.broadcast %cst_4 : f32 to vector<16x128xf32>
    %14 = arith.select %12, %4, %13 : vector<16x128xi1>, vector<16x128xf32>
    %cst_5 = arith.constant dense<0.000000e+00> : vector<16xf32>
    %15 = vector.multi_reduction <add>, %14, %cst_5 [1] : vector<16x128xf32> to vector<16xf32>
    %16 = vector.shape_cast %15 : vector<16xf32> to vector<16x1xf32>
    %cst_6 = arith.constant dense<0.000000e+00> : vector<16xf32>
    %17 = vector.multi_reduction <add>, %4, %cst_6 [1] : vector<16x128xf32> to vector<16xf32>
    %18 = vector.shape_cast %17 : vector<16xf32> to vector<16x1xf32>
    %cst_7 = arith.constant -7.87401571E-4 : f32
    %19 = vector.broadcast %cst_7 : f32 to vector<16x1xf32>
    %20 = arith.mulf %19, %18 : vector<16x1xf32>
    %cst_8 = arith.constant 0.899212599 : f32
    %21 = vector.broadcast %cst_8 : f32 to vector<16x1xf32>
    %22 = arith.mulf %21, %16 : vector<16x1xf32>
    %23 = arith.subf %20, %22 : vector<16x1xf32>
    %24 = arith.addf %23, %8 : vector<16x1xf32>
    %c16_i32 = arith.constant 16 : i32
    %25 = arith.muli %arg0, %c16_i32 : i32
    %26 = tpu.iota {dimensions = array<i32: 0>} : vector<16x1xi32>
    %27 = vector.broadcast %25 : i32 to vector<16x1xi32>
    %28 = arith.addi %27, %26 : vector<16x1xi32>
    %c16_i32_9 = arith.constant 16 : i32
    %29 = vector.broadcast %c16_i32_9 : i32 to vector<16x1xi32>
    %30 = arith.cmpi slt, %28, %29 : vector<16x1xi32>
    %cst_10 = arith.constant 0.000000e+00 : f32
    %31 = vector.broadcast %cst_10 : f32 to vector<16x1xf32>
    %32 = arith.select %30, %24, %31 : vector<16x1xi1>, vector<16x1xf32>
    %33 = vector.shape_cast %32 : vector<16x1xf32> to vector<1x16x1xf32>
    %cst_11 = arith.constant dense<0.000000e+00> : vector<1xf32>
    %34 = vector.multi_reduction <add>, %33, %cst_11 [1, 2] : vector<1x16x1xf32> to vector<1xf32>
    %35 = vector.shape_cast %34 : vector<1xf32> to vector<1x1x1xf32>
    %36 = vector.extract %35[0, 0, 0] : f32 from vector<1x1x1xf32>
    %37 = vector.broadcast %36 : f32 to vector<1x1x1xf32>
    %c0_12 = arith.constant 0 : index
    %c0_13 = arith.constant 0 : index
    %c0_14 = arith.constant 0 : index
    %38 = vector.load %arg3[%c0_12, %c0_13, %c0_14] : memref<1x1x1xf32, #tpu.memory_space<vmem>>, vector<1x1x1xf32>
    tpu.vector_store %arg3[%c0_12, %c0_13, %c0_14], %37 {strides = array<i32>} : memref<1x1x1xf32, #tpu.memory_space<vmem>>, vector<1x1x1xf32>,
    return
  }
  func.func @transform_0(%arg0: i32) -> (i32, i32) {
    %c0_i32 = arith.constant 0 : i32
    %c0_i32_0 = arith.constant 0 : i32
    return %arg0, %c0_i32 : i32, i32
  }
  func.func @transform_1(%arg0: i32) -> (i32, i32) {
    %c0_i32 = arith.constant 0 : i32
    %c0_i32_0 = arith.constant 0 : i32
    return %arg0, %c0_i32 : i32, i32
  }
  func.func @transform_2(%arg0: i32) -> (i32, i32, i32) {
    %c0_i32 = arith.constant 0 : i32
    %c0_i32_0 = arith.constant 0 : i32
    %c0_i32_1 = arith.constant 0 : i32
    return %arg0, %c0_i32, %c0_i32_0 : i32, i32, i32
  }
}

</mosaic_0001>

<bundles_post_ra>
// kernel: tpu_custom_call.1
= control target key start
LH: loop header
LB: loop body
LE: loop exit
PB: predicated region body
PF: predicated region fallthrough
CT: control target
= control target key end

     0   :  { %v139_v2 = vmov 0   ;;  %s171_s0 = inlined_call_operand.vmem [shape: f32[16,128], index: 0, kind: input, shape index: {}]   ;;  %s172_s1 = inlined_call_operand.vmem [shape: s32[16,1], index: 1, kind: input, shape index: {}]   ;;  %s173_s2 = inlined_call_operand.hbm [shape: f32[1,1,1], index: 2, kind: output, shape index: {}]  }
   0x1   :  { %v12_v0 = vld [vmem:[%s171_s0] sm:$0xff]  ;;  %107 = vset.pattern.permute.xlu1 %v139_v2 }
   0x2   :  { %v32_v1 = vld [vmem:[%s172_s1] sm:$0xff]  ;;  %14 = vmax.xlane.f32.xlu0 %v12_v0 }
   0x3   :  { %7 = vsyncpa [#allocation3], 0  ;;  %v13_v3 = vld [vmem:[%s171_s0 + $0x8] sm:$0xff]  ;;  %37 = vperm.xlu1 %107, %v32_v1   ;;  %108 = vset.pattern.permute.xlu0 %v139_v2  ;;  %v34_v11 = vlaneseq  ;;  %vm73_vm2 = vcmask 7168   ;;  %s140_s0 = smov [#allocation2]   ;;  %vm87_vm3 = vcmask 0  }
   0x4   :  { %v33_v4 = vld [vmem:[%s172_s1 + $0x8] sm:$0xff]  ;;  %s95_s1 = sshll.u32 %s140_s0, 4  ;;  %s96_s1 = int_to_ptr.vmem [resolvable:$true] %s95_s1 }
   0x5   :  { %v35_v13 = vand.u32 127, %v34_v11  ;;  %s117_s18 = scalar_lea.vmem %s96_s1, 16  ;;  %s121_s19 = scalar_lea.vmem %s96_s1, 32 }
   0x6   :  { %16 = vmax.xlane.f32.xlu0 %v13_v3  ;;  %p118_p0 = scmp.ne.s32.totalorder %s96_s1, %s117_s18  ;;  %p122_p1 = scmp.lt.s32.totalorder %s96_s1, %s96_s1 }
   0x7   :  { %40 = vperm.xlu1 %107, %v33_v4   ;;  %p123_p2 = scmp.lt.s32.totalorder %s121_s19, %s117_s18 }
   0x9   :  { %p124_p3 = por %p123_p2, %p122_p1 }
   0xb   :  { %p125_p4 = pnand %p124_p3, %p118_p0 }
  0x7e   :  { %v38_v12 = vpop.permute.xlu1 %37 }
  0x7f   :  { %vm42_vm0 = vcmp.eq.s32.totalorder %v35_v13, %v38_v12 }
  0x82   :  { %v41_v15 = vpop.permute.xlu1 %40 }
  0x83   :  { %vm43_vm1 = vcmp.eq.s32.totalorder %v35_v13, %v41_v15 }
  0x8b   :  { %v15_v5 = vpop.xlane.xlu0 %14 }
  0x8c   :  { %v18_v6 = vsub.f32 %v12_v0, %v15_v5 }
  0x8e   :  { %v20_v7 = vmul.f32 1.442695, %v18_v6  ;;  %v44_v17 = vsel %vm42_vm0, %v18_v6, 0.0 }
  0x8f   :  { %v17_v8 = vpop.xlane.xlu0 %16 }
  0x90   :  { %109 = vpow2.f32 %v20_v7  ;;  %v19_v9 = vsub.f32 %v13_v3, %v17_v8 }
  0x92   :  { %v22_v10 = vmul.f32 1.442695, %v19_v9  ;;  %v45_v18 = vsel %vm43_vm1, %v19_v9, 0.0 }
  0x94   :  { %111 = vpow2.f32 %v22_v10 }
  0x9d   :  { %v110_v14 = vpop.eup %109 }
  0x9e   :  { %24 = vadd.xlane.f32.xlu0 %v110_v14 }
  0xa1   :  { %v112_v16 = vpop.eup %111 }
  0xa2   :  { %46 = vadd.xlane.f32.xlu0 %v44_v17  ;;  %26 = vadd.xlane.f32.xlu1 %v112_v16 }
  0xa6   :  { %48 = vadd.xlane.f32.xlu0 %v45_v18 }
  0xaa   :  { %50 = vadd.xlane.f32.xlu0 %v18_v6 }
  0xae   :  { %52 = vadd.xlane.f32.xlu0 %v19_v9 }
 0x127   :  { %v25_v19 = vpop.xlane.xlu0 %24 }
 0x128   :  { %113 = vlog2.f32 %v25_v19 }
 0x12b   :  { %v27_v20 = vpop.xlane.xlu1 %26  ;;  %v47_v21 = vpop.xlane.xlu0 %46 }
 0x12c   :  { %115 = vlog2.f32 %v27_v20  ;;  %v56_v24 = vmul.f32 0.8992126, %v47_v21 }
 0x12f   :  { %v49_v22 = vpop.xlane.xlu0 %48 }
 0x130   :  { %v57_v30 = vmul.f32 0.8992126, %v49_v22 }
 0x133   :  { %v51_v23 = vpop.xlane.xlu0 %50 }
 0x134   :  { %v54_v25 = vmul.f32 -0.0007874016, %v51_v23 }
 0x135   :  { %v114_v26 = vpop.eup %113 }
 0x136   :  { %v29_v27 = vmul.f32 0.6931472, %v114_v26  ;;  %v58_v28 = vsub.f32 %v54_v25, %v56_v24 }
 0x137   :  { %v53_v29 = vpop.xlane.xlu0 %52 }
 0x138   :  { %v55_v31 = vmul.f32 -0.0007874016, %v53_v29  ;;  %v60_v35 = vadd.f32 %v58_v28, %v29_v27 }
 0x139   :  { %v116_v32 = vpop.eup %115 }
 0x13a   :  { %v31_v33 = vmul.f32 0.6931472, %v116_v32  ;;  %v59_v34 = vsub.f32 %v55_v31, %v57_v30  ;;  %v74_v37 = vsel %vm73_vm2, %v60_v35, 0.0 }
 0x13c   :  { %v61_v36 = vadd.f32 %v59_v34, %v31_v33 }
 0x13e   :  { %v75_v38 = vsel %vm73_vm2, %v61_v36, 0.0 }
 0x13f   :  { %v76_v39 = vadd.f32 %v75_v38, %v74_v37 }
 0x141   :  { %77 = vadd.xlane.f32.xlu0 %v76_v39 }
 0x1ca   :  { %v78_v40 = vpop.xlane.xlu0 %77 }
 0x1cb   :  { %v79_v41 = vrot.slane %v78_v40, 4 }
 0x1cd   :  { %v80_v42 = vadd.f32 %v79_v41, %v78_v40 }
 0x1cf   :  { %v81_v43 = vrot.slane %v80_v42, 2 }
 0x1d1   :  { %v82_v44 = vadd.f32 %v81_v43, %v80_v42 }
 0x1d3   :  { %v83_v45 = vrot.slane %v82_v44, 1 }
 0x1d5   :  { %v84_v46 = vadd.f32 %v83_v45, %v82_v44 }
 0x1d7   :  { %103 = vpush %v84_v46 }
 0x208   :  { %s104_s17 = spop %103 }
 0x209   :  { %v86_v47 = vstv %s104_s17 }
 0x20a   :  { %88 = vst.msk [vmem:[#allocation2] sm:$0x1] %vm87_vm3, %v86_v47 }
 0x20b   :  { %128 = shalt.err (!%p125_p4)
}
 0x20c   :  { %98 = dma.vmem_to_hbm [thread:$0]  %s96_s1, 16, %s173_s2, [#allocation3]  }
 0x20d   :  { %137 = dma.done.wait [#allocation3], 16  }
 0x20e   :  { %138 = vsyncadd [#allocation3], 4294967280 }
 0x20f   :  { %102 = vsyncpa [#allocation3], 1 }

</bundles_post_ra>
